<compile_context>
chip_gen: v5e
topology: v5e:2x2
jax: 0.10.0
libtpu: 0.0.40
codegen_flags: <defaults>
</compile_context>

<pallas_src>
import jax
import jax.numpy as jnp
from jax.experimental import pallas as pl
from jax.experimental.pallas import tpu as pltpu


def _merge_kernel(x1_ref, x2_ref, x3_ref, w1_ref, w2_ref, w3_ref, b_ref, o_ref):
    # Refs (batch dim squeezed out by the BlockSpec):
    #   x*_ref : (C_i, ts)        activations; channels on sublanes, spatial on lanes
    #   w*_ref : (out_dim, C_i)   pre-split 1x1-conv weight slices (resident)
    #   b_ref  : (out_dim, 1)     f32 bias, added on the f32 accumulator
    #   o_ref  : (out_dim, ts)    lane-dense output tile
    # TODO(synk): if the Mosaic dump shows a per-step weight layout change before the
    # vmatmul, pre-lay out / pre-transpose the weight slices in the wrapper instead.
    acc = jnp.dot(w1_ref[...], x1_ref[...], preferred_element_type=jnp.float32)
    acc = acc + jnp.dot(w2_ref[...], x2_ref[...], preferred_element_type=jnp.float32)
    acc = acc + jnp.dot(w3_ref[...], x3_ref[...], preferred_element_type=jnp.float32)
    o_ref[...] = (acc + b_ref[...]).astype(o_ref.dtype)


_VMEM_LIMIT_BYTES = 48 * 1024 * 1024   # explicit scoped-VMEM limit: headroom on v7x (64 MiB
                                       # physical/TC), well above v5e's 16 MiB default scope.
_VMEM_TILE_BUDGET = 36 * 1024 * 1024   # budget for the double-buffered per-step tiles.


def _round_up(x, m):
    return (x + m - 1) // m * m


def merge_from_em(feature, f_em_z, f_em_out, weight, bias, *,
                  tile_spatial=8192, compute_dtype=jnp.bfloat16, out_dtype=None):
    """feature/f_em_z/f_em_out: NCHW arrays with identical N,H,W.
    weight: (out_dim, in_dim, 1, 1) torch Conv2d layout; bias: (out_dim,).
    compute_dtype: dtype activations/weights are cast to before the kernel
      (None -> keep input dtype).  Accumulation is always f32.
    out_dtype: output dtype (None -> feature.dtype)."""
    N, C1, H, W = feature.shape
    C2 = f_em_z.shape[1]
    C3 = f_em_out.shape[1]
    in_dim = C1 + C2 + C3
    out_dim = weight.shape[0]
    assert weight.shape[1] == in_dim and weight.shape[2:] == (1, 1)
    assert f_em_z.shape[0] == N and f_em_out.shape[0] == N
    assert f_em_z.shape[2:] == (H, W) and f_em_out.shape[2:] == (H, W)

    if compute_dtype is None:
        compute_dtype = feature.dtype
    if out_dtype is None:
        out_dtype = feature.dtype

    S = H * W
    # NCHW -> (N, C, H*W): pure contiguous reshape, no transpose / extra HBM pass.
    x1 = feature.reshape(N, C1, S).astype(compute_dtype)
    x2 = f_em_z.reshape(N, C2, S).astype(compute_dtype)
    x3 = f_em_out.reshape(N, C3, S).astype(compute_dtype)

    # Pre-split the fused conv weight so the kernel never concatenates channels
    # in VMEM.  Bias stays f32 (added on the f32 accumulator) -> no silent downcast.
    w2d = weight[:, :, 0, 0]
    w1 = w2d[:, :C1].astype(compute_dtype)
    w2 = w2d[:, C1:C1 + C2].astype(compute_dtype)
    w3 = w2d[:, C1 + C2:].astype(compute_dtype)
    b2d = bias.reshape(out_dim, 1).astype(jnp.float32)

    # --- spatial tile (lane axis) sizing -------------------------------------------------
    # Double-buffered per-step footprint ~ 2 * (sum_i pad(C_i) * act_itemsize
    #                                           + pad(out_dim) * out_itemsize) * ts.
    in_itemsize = jnp.dtype(compute_dtype).itemsize
    out_itemsize = jnp.dtype(out_dtype).itemsize
    in_sub = 32 // in_itemsize          # sublane packing: 8 rows f32, 16 rows bf16
    out_sub = 32 // out_itemsize
    cpad = sum(_round_up(c, in_sub) for c in (C1, C2, C3))
    opad = _round_up(out_dim, out_sub)
    bytes_per_lane = 2 * (cpad * in_itemsize + opad * out_itemsize)
    max_ts = max(128, (_VMEM_TILE_BUDGET // bytes_per_lane) // 128 * 128)
    ts = min(int(tile_spatial), int(max_ts))
    assert ts % 128 == 0
    if S <= ts:
        ts = S                          # full-extent block: always layout legal
    n_s = pl.cdiv(S, ts)

    # Spatial axis leads the grid so the v7x megacore shards it even when N is 1-2.
    grid = (n_s, N)

    cost = pl.CostEstimate(
        flops=2 * N * S * in_dim * out_dim,
        transcendentals=0,
        bytes_accessed=(N * S * in_dim * in_itemsize
                        + N * S * out_dim * out_itemsize
                        + in_dim * out_dim * in_itemsize
                        + out_dim * 4),
    )

    # TODO(synk): if xprof still shows exposed DMA at tile boundaries, add
    # pipeline_mode=pl.Buffered(3) to the three activation BlockSpecs only.
    out = pl.pallas_call(
        _merge_kernel,
        out_shape=jax.ShapeDtypeStruct((N, out_dim, S), out_dtype),
        grid_spec=pltpu.PrefetchScalarGridSpec(
            num_scalar_prefetch=0,
            grid=grid,
            in_specs=[
                pl.BlockSpec((None, C1, ts), lambda s, n: (n, 0, s)),
                pl.BlockSpec((None, C2, ts), lambda s, n: (n, 0, s)),
                pl.BlockSpec((None, C3, ts), lambda s, n: (n, 0, s)),
                pl.BlockSpec((out_dim, C1), lambda s, n: (0, 0)),
                pl.BlockSpec((out_dim, C2), lambda s, n: (0, 0)),
                pl.BlockSpec((out_dim, C3), lambda s, n: (0, 0)),
                pl.BlockSpec((out_dim, 1), lambda s, n: (0, 0)),
            ],
            out_specs=pl.BlockSpec((None, out_dim, ts), lambda s, n: (n, 0, s)),
        ),
        compiler_params=pltpu.CompilerParams(
            dimension_semantics=("parallel", "parallel"),
            vmem_limit_bytes=_VMEM_LIMIT_BYTES),
        cost_estimate=cost,
    )(x1, x2, x3, w1, w2, w3, b2d)

    # (N, out_dim, H*W) -> NCHW: pure reshape, no transpose.
    return out.reshape(N, out_dim, H, W)


def merge_from_em_apply(fdict, key, weight, bias, **kwargs):
    """Mirrors MergeFromEM.forward on a dict of NCHW features."""
    feature = fdict["dec_feature"]
    f_em_z = fdict["all_features"][f"{key}_z"]
    f_em_out = fdict["all_features"][f"{key}_out"]
    assert feature.shape[2:4] == f_em_z.shape[2:4] == f_em_out.shape[2:4]
    fdict["dec_feature"] = merge_from_em(feature, f_em_z, f_em_out, weight, bias, **kwargs)
    return fdict


if __name__ == "__main__":
    # Small synthetic config: dec_feature C=4, em_z C=4, em_out C=4 -> in_dim=12, out_dim=8
    N, H, W = 2, 16, 16
    C1, C2, C3 = 4, 4, 4
    in_dim, out_dim = C1 + C2 + C3, 8
    em_key = "enc4"

    root = jax.random.PRNGKey(0)
    k_f, k_z, k_o, k_w, k_b = jax.random.split(root, 5)

    dec_feature = jax.random.normal(k_f, (N, C1, H, W), dtype=jnp.float32)
    f_em_z = jax.random.normal(k_z, (N, C2, H, W), dtype=jnp.float32)
    f_em_out = jax.random.normal(k_o, (N, C3, H, W), dtype=jnp.float32)

    # Deterministic synthetic conv_k1s1 params (torch Conv2d shape conventions).
    weight = jax.random.normal(k_w, (out_dim, in_dim, 1, 1), dtype=jnp.float32) * 0.1
    bias = jax.random.normal(k_b, (out_dim,), dtype=jnp.float32) * 0.1

    # Plain-JAX reference: 1x1 conv on the concatenated channels (f32).
    x_cat = jnp.concatenate([dec_feature, f_em_z, f_em_out], axis=1)
    ref = jnp.einsum("nchw,oc->nohw", x_cat, weight[:, :, 0, 0]) + bias[None, :, None, None]

    # --- exact path (f32 compute): matches the PyTorch f32 Conv2d tightly -----------------
    out_f32 = merge_from_em(dec_feature, f_em_z, f_em_out, weight, bias,
                            compute_dtype=jnp.float32)
    out_f32 = jax.block_until_ready(out_f32)
    assert out_f32.shape == (N, out_dim, H, W), out_f32.shape
    err = float(jnp.max(jnp.abs(out_f32 - ref)))
    assert jnp.allclose(out_f32, ref, atol=1e-4, rtol=1e-4), err

    # --- fast path (bf16 I/O, f32 accumulation): the recommended production config --------
    fdict = {
        "dec_feature": dec_feature,
        "all_features": {f"{em_key}_z": f_em_z, f"{em_key}_out": f_em_out},
    }
    fdict = merge_from_em_apply(fdict, em_key, weight, bias,
                                compute_dtype=jnp.bfloat16, out_dtype=jnp.float32)
    out_bf16 = jax.block_until_ready(fdict["dec_feature"])
    assert out_bf16.shape == (N, out_dim, H, W), out_bf16.shape
    err_bf16 = float(jnp.max(jnp.abs(out_bf16 - ref)))
    assert jnp.allclose(out_bf16, ref, atol=3e-2, rtol=3e-2), err_bf16

    print("KERNEL_OK")
</pallas_src>

<mosaic_0001>
module attributes {stable_mosaic.version = 11 : i64} {
  func.func @_merge_kernel(%arg0: i32, %arg1: i32, %arg2: memref<1x4x256xf32, #tpu.memory_space<vmem>>, %arg3: memref<1x4x256xf32, #tpu.memory_space<vmem>>, %arg4: memref<1x4x256xf32, #tpu.memory_space<vmem>>, %arg5: memref<8x4xf32, #tpu.memory_space<vmem>>, %arg6: memref<8x4xf32, #tpu.memory_space<vmem>>, %arg7: memref<8x4xf32, #tpu.memory_space<vmem>>, %arg8: memref<8x1xf32, #tpu.memory_space<vmem>>, %arg9: memref<1x8x256xf32, #tpu.memory_space<vmem>>) attributes {dimension_semantics = [#tpu.dimension_semantics<parallel>, #tpu.dimension_semantics<parallel>], iteration_bounds = array<i64: 1, 2>, scalar_prefetch = 0 : i64, scratch_operands = 0 : i64, tpu.core_type = #tpu.core_type<tc>, window_params = [{transform_indices = @transform_0, window_bounds = array<i64: 1, 4, 256>}, {transform_indices = @transform_1, window_bounds = array<i64: 1, 4, 256>}, {transform_indices = @transform_2, window_bounds = array<i64: 1, 4, 256>}, {pipeline_mode = #tpu.pipeline_mode<synchronous>, transform_indices = @transform_3, window_bounds = array<i64: 8, 4>}, {pipeline_mode = #tpu.pipeline_mode<synchronous>, transform_indices = @transform_4, window_bounds = array<i64: 8, 4>}, {pipeline_mode = #tpu.pipeline_mode<synchronous>, transform_indices = @transform_5, window_bounds = array<i64: 8, 4>}, {pipeline_mode = #tpu.pipeline_mode<synchronous>, transform_indices = @transform_6, window_bounds = array<i64: 8, 1>}, {transform_indices = @transform_7, window_bounds = array<i64: 1, 8, 256>}]} {
    %c0 = arith.constant 0 : index
    %c0_0 = arith.constant 0 : index
    %0 = vector.load %arg5[%c0, %c0_0] : memref<8x4xf32, #tpu.memory_space<vmem>>, vector<8x4xf32>
    %c0_1 = arith.constant 0 : index
    %c0_2 = arith.constant 0 : index
    %c0_3 = arith.constant 0 : index
    %1 = vector.load %arg2[%c0_1, %c0_2, %c0_3] : memref<1x4x256xf32, #tpu.memory_space<vmem>>, vector<1x4x256xf32>
    %2 = vector.shape_cast %1 : vector<1x4x256xf32> to vector<4x256xf32>
    %cst = arith.constant dense<0.000000e+00> : vector<8x256xf32>
    %3 = tpu.matmul %0, %2, %cst {dimension_numbers = #tpu.dot_dimension_numbers<[1], [0], [0], [1], [0, 0, 1, 1], [], []>} : vector<8x4xf32>, vector<4x256xf32>, vector<8x256xf32> -> vector<8x256xf32>
    %c0_4 = arith.constant 0 : index
    %c0_5 = arith.constant 0 : index
    %4 = vector.load %arg6[%c0_4, %c0_5] : memref<8x4xf32, #tpu.memory_space<vmem>>, vector<8x4xf32>
    %c0_6 = arith.constant 0 : index
    %c0_7 = arith.constant 0 : index
    %c0_8 = arith.constant 0 : index
    %5 = vector.load %arg3[%c0_6, %c0_7, %c0_8] : memref<1x4x256xf32, #tpu.memory_space<vmem>>, vector<1x4x256xf32>
    %6 = vector.shape_cast %5 : vector<1x4x256xf32> to vector<4x256xf32>
    %cst_9 = arith.constant dense<0.000000e+00> : vector<8x256xf32>
    %7 = tpu.matmul %4, %6, %cst_9 {dimension_numbers = #tpu.dot_dimension_numbers<[1], [0], [0], [1], [0, 0, 1, 1], [], []>} : vector<8x4xf32>, vector<4x256xf32>, vector<8x256xf32> -> vector<8x256xf32>
    %8 = arith.addf %3, %7 : vector<8x256xf32>
    %c0_10 = arith.constant 0 : index
    %c0_11 = arith.constant 0 : index
    %9 = vector.load %arg7[%c0_10, %c0_11] : memref<8x4xf32, #tpu.memory_space<vmem>>, vector<8x4xf32>
    %c0_12 = arith.constant 0 : index
    %c0_13 = arith.constant 0 : index
    %c0_14 = arith.constant 0 : index
    %10 = vector.load %arg4[%c0_12, %c0_13, %c0_14] : memref<1x4x256xf32, #tpu.memory_space<vmem>>, vector<1x4x256xf32>
    %11 = vector.shape_cast %10 : vector<1x4x256xf32> to vector<4x256xf32>
    %cst_15 = arith.constant dense<0.000000e+00> : vector<8x256xf32>
    %12 = tpu.matmul %9, %11, %cst_15 {dimension_numbers = #tpu.dot_dimension_numbers<[1], [0], [0], [1], [0, 0, 1, 1], [], []>} : vector<8x4xf32>, vector<4x256xf32>, vector<8x256xf32> -> vector<8x256xf32>
    %13 = arith.addf %8, %12 : vector<8x256xf32>
    %c0_16 = arith.constant 0 : index
    %c0_17 = arith.constant 0 : index
    %14 = vector.load %arg8[%c0_16, %c0_17] : memref<8x1xf32, #tpu.memory_space<vmem>>, vector<8x1xf32>
    %15 = vector.broadcast %14 : vector<8x1xf32> to vector<8x256xf32>
    %16 = arith.addf %13, %15 : vector<8x256xf32>
    %c0_18 = arith.constant 0 : index
    %c0_19 = arith.constant 0 : index
    %c0_20 = arith.constant 0 : index
    %17 = vector.load %arg9[%c0_18, %c0_19, %c0_20] : memref<1x8x256xf32, #tpu.memory_space<vmem>>, vector<1x8x256xf32>
    %18 = vector.shape_cast %17 : vector<1x8x256xf32> to vector<8x256xf32>
    %19 = vector.shape_cast %16 : vector<8x256xf32> to vector<1x8x256xf32>
    tpu.vector_store %arg9[%c0_18, %c0_19, %c0_20], %19 {strides = array<i32>} : memref<1x8x256xf32, #tpu.memory_space<vmem>>, vector<1x8x256xf32>,
    return
  }
  func.func @transform_0(%arg0: i32, %arg1: i32) -> (i32, i32, i32) {
    %c0_i32 = arith.constant 0 : i32
    %c0_i32_0 = arith.constant 0 : i32
    return %arg1, %c0_i32, %arg0 : i32, i32, i32
  }
  func.func @transform_1(%arg0: i32, %arg1: i32) -> (i32, i32, i32) {
    %c0_i32 = arith.constant 0 : i32
    %c0_i32_0 = arith.constant 0 : i32
    return %arg1, %c0_i32, %arg0 : i32, i32, i32
  }
  func.func @transform_2(%arg0: i32, %arg1: i32) -> (i32, i32, i32) {
    %c0_i32 = arith.constant 0 : i32
    %c0_i32_0 = arith.constant 0 : i32
    return %arg1, %c0_i32, %arg0 : i32, i32, i32
  }
  func.func @transform_3(%arg0: i32, %arg1: i32) -> (i32, i32) {
    %c0_i32 = arith.constant 0 : i32
    %c0_i32_0 = arith.constant 0 : i32
    %c0_i32_1 = arith.constant 0 : i32
    return %c0_i32, %c0_i32_0 : i32, i32
  }
  func.func @transform_4(%arg0: i32, %arg1: i32) -> (i32, i32) {
    %c0_i32 = arith.constant 0 : i32
    %c0_i32_0 = arith.constant 0 : i32
    %c0_i32_1 = arith.constant 0 : i32
    return %c0_i32, %c0_i32_0 : i32, i32
  }
  func.func @transform_5(%arg0: i32, %arg1: i32) -> (i32, i32) {
    %c0_i32 = arith.constant 0 : i32
    %c0_i32_0 = arith.constant 0 : i32
    %c0_i32_1 = arith.constant 0 : i32
    return %c0_i32, %c0_i32_0 : i32, i32
  }
  func.func @transform_6(%arg0: i32, %arg1: i32) -> (i32, i32) {
    %c0_i32 = arith.constant 0 : i32
    %c0_i32_0 = arith.constant 0 : i32
    %c0_i32_1 = arith.constant 0 : i32
    return %c0_i32, %c0_i32_0 : i32, i32
  }
  func.func @transform_7(%arg0: i32, %arg1: i32) -> (i32, i32, i32) {
    %c0_i32 = arith.constant 0 : i32
    %c0_i32_0 = arith.constant 0 : i32
    return %arg1, %c0_i32, %arg0 : i32, i32, i32
  }
}

</mosaic_0001>

<bundles_post_ra>
// kernel: tpu_custom_call.1
= control target key start
LH: loop header
LB: loop body
LE: loop exit
PB: predicated region body
PF: predicated region fallthrough
CT: control target
= control target key end

     0   :  { %s1108_s0 = inlined_call_operand.vmem [shape: f32[2,4,256], index: 0, kind: input, shape index: {}]   ;;  %s1109_s1 = inlined_call_operand.vmem [shape: f32[2,4,256], index: 1, kind: input, shape index: {}]   ;;  %s1110_s2 = inlined_call_operand.hbm [shape: f32[2,4,256], index: 2, kind: input, shape index: {}]   ;;  %s1111_s3 = inlined_call_operand.vmem [shape: f32[8,4], index: 3, kind: input, shape index: {}]   ;;  %s1112_s4 = inlined_call_operand.vmem [shape: f32[8,4], index: 4, kind: input, shape index: {}]   ;;  %s1113_s5 = inlined_call_operand.vmem [shape: f32[8,4], index: 5, kind: input, shape index: {}]   ;;  %s1114_s6 = inlined_call_operand.vmem [shape: f32[8,1], index: 6, kind: input, shape index: {}]   ;;  %s1115_s7 = inlined_call_operand.hbm [shape: f32[2,8,256], index: 7, kind: output, shape index: {}]  }
   0x1   :  { %1116 = sst [smem:[#allocation8_spill]] %s1110_s2 }
   0x2   :  { %12 = vsyncpa [#allocation3], 0 }
   0x3   :  { %14 = vsyncpa [#allocation3 + $0x1], 0 }
   0x4   :  { %15 = vsyncpa [#allocation4], 0 }
   0x5   :  { %17 = vsyncpa [#allocation4 + $0x1], 0  ;;  %s955_s24 = smov 0   ;;  %s957_s25 = smov 0  }
   0x6   :  { %s959_s26 = smov 0   ;;  %s961_s27 = smov 0  }
   0x7   :  { %s963_s28 = smov 0   ;;  %s965_s29 = smov 0  }
   0x8 LB: > { %s701_s30 = sadd.s32 4294967295, %s912_s29   ;;  %s702_s8 = sadd.s32 4294967294, %s912_s29   ;;  %s912_s29 = sphi %s965_s29, %s23_s29   ;;  %s908_s28 = sphi %s963_s28, %s1126_s28   ;;  %s904_s27 = sphi %s961_s27, %s1125_s27   ;;  %s900_s26 = sphi %s959_s26, %s1124_s26   ;;  %s896_s25 = sphi %s957_s25, %s1123_s25   ;;  %s892_s24 = sphi %s955_s24, %s1122_s24  }
   0x9   : > { %s32_s9 = sadd.s32 1, %s908_s28  ;;  %s100_s10 = sadd.s32 1, %s900_s26 }
   0xa   : > { %p33_p0 = scmp.ge.s32.totalorder %s32_s9, 2  ;;  %p107_p1 = scmp.ne.s32.totalorder %s900_s26, %s896_s25 }
   0xb   : > { %p108_p2 = scmp.eq.s32.totalorder %s912_s29, 0  ;;  %p113_p3 = scmp.ne.s32.totalorder %s896_s25, %s892_s24 }
   0xc   : > { %s1128_s9 = smov (%p33_p0, %s32_s9), 0  ;;  %p114_p5 = scmp.eq.s32.totalorder %s701_s30, 0 }
   0xd   : > { %p996_p4 = por %p108_p2, %p107_p1  ;;  %s95_s12 = ssub.s32 %s908_s28, %s1128_s9 }
   0xe   : > { %p223_p6 = scmp.eq.s32.totalorder %s701_s30, 1  ;;  %p98_p7 = scmp.eq.s32.totalorder %s95_s12, 0 }
   0xf   : > { %p1002_p8 = por %p114_p5, %p113_p3  ;;  %p229_p10 = scmp.eq.s32.totalorder %s702_s8, 1 }
  0x10   : > { %p1006_p9 = por %p223_p6, %p107_p1  ;;  %p704_p12 = scmp.ge.s32.totalorder %s912_s29, 2 }
  0x11   : > { %s1011_s15 = scalar_select %p98_p7, %s900_s26, %s100_s10  }
  0x12   : > { %p1013_p11 = por %p229_p10, %p113_p3  ;;  %p748_p13 = scmp.lt.s32.totalorder %s912_s29, 2 }
  0x13   : > { %s287_s17 = sand.u32 1, %s900_s26   ;;  %s732_s19 = sshll.u32 %s908_s28, 3 }
  0x14   : > { %s705_s18 = sshll.u32 %s287_s17, 3  ;;  %s1121_s2 = sld [smem:[#allocation8_spill]] }
  0x15   : > { %s291_s23 = scalar_lea.vmem [#allocation2], %s705_s18  ;;  %p741_p0 = pnand %p748_p13, %p996_p4 }
  0x16   : > { %s302_s30 = sshll.u32 %s291_s23, 4  ;;  %p708_p1 = scmp.ge.s32.totalorder %s912_s29, 1  ;;  %s303_s30 = int_to_ptr.vmem [resolvable:$true] %s302_s30 }
  0x17   : > { %p307_p2 = scmp.lt.s32.totalorder %s912_s29, 3  ;;  %s288_s8 = scalar_lea.sflag [#allocation3], %s287_s17 }
  0x19   : > { %p308_p3 = pnand %p708_p1, %p307_p2 }
  0x1a   : > { %s298_s22 = scalar_lea.hbm %s1121_s2, %s732_s19  ;;  %s1029_s10 = sand.u32 (!%p308_p3), 1, %s896_s25  }
  0x1b   : > { %s300_s12 = sshll.u32 %s298_s22, 4  ;;  %311 = sbr.rel (%p308_p3) target bundleno = 199 (0xc7), region = 48  ;;  %s301_s12 = int_to_ptr.hbm [resolvable:$true] %s300_s12 }
  0x1c   : > { %743 = dma.hbm_to_vmem [thread:$0]  (!%p741_p0), %s301_s12, 128, %s303_s30, %s288_s8  }
  0x1d   : > { %s709_s19 = sshll.u32 (!%p308_p3), %s1029_s10, 3  ;;  %s314_s18 = scalar_lea.sflag (!%p308_p3), [#allocation3], %s1029_s10 }
  0x1e   : > { %s317_s20 = scalar_lea.vmem (!%p308_p3), [#allocation2], %s709_s19 }
  0x20   : > { %883 = dma.done.wait (%p1002_p8), %s314_s18, 128  }
  0x21   : > { %885 = vsyncadd (%p1002_p8), %s314_s18, 4294967168  ;;  %p368_p4 = scmp.lt.s32.totalorder %s904_s27, 1  ;;  %v914_v0 = vmov 0   ;;  %v552_v2 = vld [vmem:[%s1114_s6] sm:$0xff]  ;;  %vm401_vm0 = vcmask 1043456   ;;  %vm397_vm1 = vcmask 31744  }
  0x22   : > { %799 = vset.pattern.permute.xlu0 %v914_v0  ;;  %v391_v4 = vld [vmem:[%s1112_s4] sm:$0xff]  ;;  %v498_v7 = vld [vmem:[%s317_s20] sm:$0xff]  ;;  %s710_s20 = sshll.u32 %s1029_s10, 4  ;;  %s735_s22 = sshll.u32 %s904_s27, 4 }
  0x23   : > { %s369_s11 = scalar_select %p368_p4, %s904_s27, 1  ;;  %555 = vperm.xlu0 %799, %v552_v2   ;;  %v389_v8 = vld [vmem:[%s1111_s3] sm:$0xff] }
  0x24   : > { %v497_v11 = vld [vmem:[%s1113_s5] sm:$0xff]  ;;  %s576_s12 = scalar_lea.hbm %s1115_s7, %s735_s22  ;;  %s366_s8 = scalar_lea.vmem [#allocation5], %s710_s20 }
  0x25   : > { %s733_s17 = sshll.u32 %s369_s11, 3  ;;  %s578_s13 = sshll.u32 %s366_s8, 4  ;;  %s579_s13 = int_to_ptr.vmem [resolvable:$true] %s578_s13 }
  0x26   : > { %s385_s23 = scalar_lea.vmem %s1109_s1, %s733_s17  ;;  %s375_s19 = scalar_lea.vmem %s1108_s0, %s733_s17 }
  0x27   : > { %v392_v1 = vld [vmem:[%s385_s23] sm:$0xff]  ;;  %s563_s27 = scalar_lea.sflag [#allocation4], %s1029_s10  ;;  %s850_s21 = scalar_lea.hbm %s1115_s7, 32 }
  0x28   : > { %394 = vst [vmem:[#allocation1] ss:$2 sm:$0xff] %v392_v1  ;;  %v390_v3 = vld [vmem:[%s375_s19] sm:$0xff]  ;;  %s580_s19 = sshll.u32 %s576_s12, 4  ;;  %s581_s19 = int_to_ptr.hbm [resolvable:$true] %s580_s19 }
  0x29   : > { %s844_s18 = sshra.s32 %s581_s19, 4  ;;  %s845_s18 = int_to_ptr.hbm [resolvable:$true] %s844_s18 }
  0x2a   : > { %s846_s11 = scalar_lea.hbm %s845_s18, 16  ;;  %p851_p8 = scmp.lt.s32.totalorder %s845_s18, %s1115_s7 }
  0x2b   : > { %p847_p5 = scmp.ne.s32.totalorder %s845_s18, %s846_s11  ;;  %p852_p10 = scmp.lt.s32.totalorder %s850_s21, %s846_s11 }
  0x2d   : > { %p848_p6 = pnand %p847_p5, %p1006_p9  ;;  %p853_p13 = por %p852_p10, %p851_p8 }
  0x2f   : > { %v395_v5 = vld.sshfl [vmem:[#allocation1] sm:$0xff pattern:$0x75316420]  ;;  %v396_v6 = vld.sshfl [vmem:[#allocation1 + $0x8] sm:$0xff pattern:$0x75316420]  ;;  %p849_p7 = pneg %p848_p6 }
  0x30   : > { %715 = vmatpush.msk.msra.mxu0 %vm401_vm0, %v395_v5  ;;  %717 = vmatpush.msk.msra.mxu1 %vm401_vm0, %v396_v6  ;;  %447 = vst [vmem:[#allocation1] ss:$2 sm:$0xff] %v390_v3 }
  0x31   : > { %716 = vmatmul.msk.f32.vlgmr.msra.gmra.mxu0 %vm397_vm1, %v391_v4  ;;  %718 = vmatmul.msk.f32.vlgmr.msra.gmra.mxu1 %vm397_vm1, %v391_v4  ;;  %p854_p0 = pnand %p853_p13, %p849_p7 }
  0x37   : > { %v448_v9 = vld.sshfl [vmem:[#allocation1] sm:$0xff pattern:$0x75316420]  ;;  %v449_v10 = vld.sshfl [vmem:[#allocation1 + $0x8] sm:$0xff pattern:$0x75316420] }
  0x38   : > { %719 = vmatpush.msk.msra.mxu2 %vm401_vm0, %v448_v9  ;;  %721 = vmatpush.msk.msra.mxu3 %vm401_vm0, %v449_v10  ;;  %500 = vst [vmem:[#allocation1] ss:$2 sm:$0xff] %v498_v7 }
  0x39   : > { %720 = vmatmul.msk.f32.vlgmr.msra.gmra.mxu2 %vm397_vm1, %v389_v8  ;;  %722 = vmatmul.msk.f32.vlgmr.msra.gmra.mxu3 %vm397_vm1, %v389_v8 }
  0x3f   : > { %v501_v12 = vld.sshfl [vmem:[#allocation1] sm:$0xff pattern:$0x75316420]  ;;  %v502_v13 = vld.sshfl [vmem:[#allocation1 + $0x8] sm:$0xff pattern:$0x75316420] }
  0x40   : > { %723 = vmatpush.msk.msrb.mxu0 %vm401_vm0, %v501_v12  ;;  %725 = vmatpush.msk.msrb.mxu1 %vm401_vm0, %v502_v13 }
  0x41   : > { %724 = vmatmul.msk.f32.vlgmr.msrb.gmra.mxu0 %vm397_vm1, %v497_v11  ;;  %726 = vmatmul.msk.f32.vlgmr.msrb.gmra.mxu1 %vm397_vm1, %v497_v11 }
  0x95   : > { %v556_v20 = vpop.permute.xlu0 %555 }
  0xae   : > { %v423_v14 = vpop.f32.mrf.mxu0  ;;  %v443_v15 = vpop.f32.mrf.mxu1 }
  0xbc   : > { %v474_v16 = vpop.f32.mrf.mxu2  ;;  %v494_v17 = vpop.f32.mrf.mxu3 }
  0xbd   : > { %v475_v18 = vadd.f32 %v474_v16, %v423_v14  ;;  %v495_v19 = vadd.f32 %v494_v17, %v443_v15 }
  0xbe   : > { %v527_v21 = vpop.f32.mrf.mxu0  ;;  %v547_v22 = vpop.f32.mrf.mxu1 }
  0xbf   : > { %v550_v23 = vadd.f32 %v527_v21, %v475_v18  ;;  %v551_v24 = vadd.f32 %v547_v22, %v495_v19 }
  0xc1   : > { %v558_v25 = vadd.f32 %v556_v20, %v550_v23  ;;  %v559_v26 = vadd.f32 %v556_v20, %v551_v24 }
  0xc3   : > { %560 = vst [vmem:[%s366_s8] sm:$0xff] %v558_v25 }
  0xc4   : > { %561 = vst [vmem:[%s366_s8 + $0x8] sm:$0xff] %v559_v26 }
  0xc5   : > { %857 = shalt.err (!%p854_p0)
}
  0xc6   : > { %738 = dma.vmem_to_hbm [thread:$0]  (%p1006_p9), %s579_s13, 256, %s581_s19, %s563_s27  }
  0xc7 PF: > { %s592_s10 = sand.u32 1, %s892_s24   ;;  %p745_p1 = pnand %p704_p12, %p1013_p11 }
  0xc8   : > { %s593_s23 = scalar_lea.sflag [#allocation4], %s592_s10 }
  0xc9   : > { %p746_p2 = pneg %p745_p1 }
  0xcb   : > { %887 = dma.done.wait (%p746_p2), %s593_s23, 256  }
  0xcc   : > { %889 = vsyncadd (%p746_p2), %s593_s23, 4294967040  ;;  %s23_s29 = sadd.s32 1, %s912_s29   ;;  %s1122_s24 = smov %s896_s25 }
  0xcd   : > { %p20_p3 = scmp.ge.s32.totalorder %s23_s29, 4   ;;  %s1123_s25 = smov %s900_s26 }
  0xce   : > { %s1124_s26 = smov %s1011_s15  ;;  %s1125_s27 = smov %s908_s28 }
  0xcf   : > { %s1126_s28 = smov %s1128_s9  ;;  %22 = sbr.rel (!%p20_p3) target bundleno = 8 (0x8), region = 99 }
  0xd4   :  { %599 = vsyncpa [#allocation3], 1 }
  0xd5   :  { %601 = vsyncpa [#allocation3 + $0x1], 1 }
  0xd6   :  { %602 = vsyncpa [#allocation4], 1 }
  0xd7   :  { %604 = vsyncpa [#allocation4 + $0x1], 1 }

</bundles_post_ra>
